<compile_context>
chip_gen: v6e
topology: v6e:2x2x1
jax: 0.10.0
libtpu: 0.0.40
codegen_flags: <defaults>
</compile_context>

<pallas_src>
import jax
import jax.numpy as jnp
from jax.experimental import pallas as pl
from jax.experimental.pallas import tpu as pltpu

STATE_DIM = 12
ACTION_DIM = 7
HIDDEN_DIM = 256
NUM_HIDDEN_LAYERS = 3

OUT_PAD = 8  # 7 -> 8 lane pad for the output / w4 / b4 (16x smaller than f32x128 pad)


def _round_up(v, m):
    return -(-v // m) * m


def _mlp_kernel(x_ref, w1_ref, b1_ref, w2_ref, b2_ref, w3_ref, b3_ref,
                w4_ref, b4_ref, o_ref):
    # Hidden layer 1: (TB, 12) bf16 @ (12, 256) bf16 -> f32 acc, bias + ReLU in f32.
    h = jnp.dot(x_ref[...], w1_ref[...], preferred_element_type=jnp.float32)
    h = jnp.maximum(h + b1_ref[...], 0.0)
    # Hidden layer 2: (TB, 256) @ (256, 256)
    h = jnp.dot(h.astype(jnp.bfloat16), w2_ref[...],
                preferred_element_type=jnp.float32)
    h = jnp.maximum(h + b2_ref[...], 0.0)
    # Hidden layer 3: (TB, 256) @ (256, 256)
    h = jnp.dot(h.astype(jnp.bfloat16), w3_ref[...],
                preferred_element_type=jnp.float32)
    h = jnp.maximum(h + b3_ref[...], 0.0)
    # Output layer: (TB, 256) @ (256, 8 zero-padded) + bias, small f32 store.
    q = jnp.dot(h.astype(jnp.bfloat16), w4_ref[...],
                preferred_element_type=jnp.float32)
    o_ref[...] = (q + b4_ref[...]).astype(o_ref.dtype)
    # TODO(synk): nn.Dropout(0.1) omitted (inference/eval semantics — identity).


def prepare_params(params):
    """One-time (outside the jit loop) cast/pad of the f32 params for the kernel.

    Weights -> bf16 (w4/b4 zero-padded from 7 to OUT_PAD=8 columns); biases stay f32
    so the bias + ReLU epilogue runs in f32 on the VPU (no bf16-VPU dependence on v5e).
    """
    w1, b1, w2, b2, w3, b3, w4, b4 = params
    w4p = jnp.zeros((HIDDEN_DIM, OUT_PAD), jnp.bfloat16)
    w4p = w4p.at[:, :ACTION_DIM].set(w4.astype(jnp.bfloat16))
    b4p = jnp.zeros((1, OUT_PAD), jnp.float32)
    b4p = b4p.at[:, :ACTION_DIM].set(b4.astype(jnp.float32))
    return (w1.astype(jnp.bfloat16), b1.astype(jnp.float32),
            w2.astype(jnp.bfloat16), b2.astype(jnp.float32),
            w3.astype(jnp.bfloat16), b3.astype(jnp.float32),
            w4p, b4p)


@jax.jit
def dqn_forward(x, prepared_params):
    """Forward pass of DQNNetwork: returns Q-values of shape (B, ACTION_DIM)."""
    w1, b1, w2, b2, w3, b3, w4, b4 = prepared_params
    B = x.shape[0]

    # Single bf16 cast in the wrapper (halves x DMA bytes; accumulation stays f32).
    x_bf = x.astype(jnp.bfloat16)

    # Batch tile heuristic:
    #   * small B: one full-dim block (no ragged edge, no alignment constraints);
    #   * large B: fill the 256-wide MXU M dim, amortize per-step overhead, and keep
    #     nb >= 2 so the "parallel" batch axis feeds both v7x TensorCores.
    if B <= 128:
        TB = B
    else:
        TB = min(512, _round_up(pl.cdiv(B, 2), 128))
    nb = pl.cdiv(B, TB)

    const = lambda i: (0, 0)   # weights/biases: same block every batch tile (resident)

    out = pl.pallas_call(
        _mlp_kernel,
        out_shape=jax.ShapeDtypeStruct((B, OUT_PAD), jnp.float32),
        grid=(nb,),
        in_specs=[
            pl.BlockSpec((TB, STATE_DIM), lambda i: (i, 0)),       # x tiles pipeline
            pl.BlockSpec((STATE_DIM, HIDDEN_DIM), const),          # w1 (12, 256)
            pl.BlockSpec((1, HIDDEN_DIM), const),                  # b1
            pl.BlockSpec((HIDDEN_DIM, HIDDEN_DIM), const),         # w2
            pl.BlockSpec((1, HIDDEN_DIM), const),                  # b2
            pl.BlockSpec((HIDDEN_DIM, HIDDEN_DIM), const),         # w3
            pl.BlockSpec((1, HIDDEN_DIM), const),                  # b3
            pl.BlockSpec((HIDDEN_DIM, OUT_PAD), const),            # w4 (256, 8 padded)
            pl.BlockSpec((1, OUT_PAD), const),                     # b4 (1, 8 padded)
        ],
        out_specs=pl.BlockSpec((TB, OUT_PAD), lambda i: (i, 0)),
        compiler_params=pltpu.CompilerParams(
            dimension_semantics=("parallel",),  # batch axis -> both TCs on v7x
        ),
    )(x_bf, w1, b1, w2, b2, w3, b3, w4, b4)

    # TODO(synk): weights (~270 KiB) re-DMA every call; for tight action-selection
    # loops amortize via a cross-pallas_call prefetch (P10) and/or single-buffer the
    # constant-index weight specs (pipeline_mode=pl.Buffered(1)).
    return out[:, :ACTION_DIM]


def xavier_uniform(key, fan_in, fan_out, dtype=jnp.float32):
    """Deterministic Xavier/Glorot uniform init (matches nn.init.xavier_uniform_)."""
    bound = jnp.sqrt(6.0 / (fan_in + fan_out))
    return jax.random.uniform(key, (fan_in, fan_out), dtype=dtype,
                              minval=-bound, maxval=bound)


def init_params(key):
    dims = [STATE_DIM] + [HIDDEN_DIM] * NUM_HIDDEN_LAYERS + [ACTION_DIM]
    keys = jax.random.split(key, len(dims) - 1)
    params = []
    for i in range(len(dims) - 1):
        w = xavier_uniform(keys[i], dims[i], dims[i + 1])
        b = jnp.full((1, dims[i + 1]), 0.01, dtype=jnp.float32)  # constant_(bias, 0.01)
        params.extend([w, b])
    return tuple(params)


if __name__ == "__main__":
    key = jax.random.PRNGKey(0)
    pkey, xkey = jax.random.split(key)

    params = init_params(pkey)            # f32 "master" params (as in the PyTorch module)
    prepared = prepare_params(params)     # one-time bf16 cast / small output padding

    batch = 8
    x = jax.random.normal(xkey, (batch, STATE_DIM), dtype=jnp.float32)

    q_values = dqn_forward(x, prepared)
    jax.block_until_ready(q_values)
    assert q_values.shape == (batch, ACTION_DIM)

    # Reference 1: same bf16-weight / f32-accumulate arithmetic in plain JAX.
    w1, b1, w2, b2, w3, b3, w4, b4 = params
    bf = jnp.bfloat16
    h = jnp.maximum(jnp.dot(x.astype(bf), w1.astype(bf),
                            preferred_element_type=jnp.float32) + b1, 0.0)
    h = jnp.maximum(jnp.dot(h.astype(bf), w2.astype(bf),
                            preferred_element_type=jnp.float32) + b2, 0.0)
    h = jnp.maximum(jnp.dot(h.astype(bf), w3.astype(bf),
                            preferred_element_type=jnp.float32) + b3, 0.0)
    ref_bf16 = jnp.dot(h.astype(bf), w4.astype(bf),
                       preferred_element_type=jnp.float32) + b4
    assert jnp.allclose(q_values, ref_bf16, atol=1e-2, rtol=1e-2)

    # Reference 2: full-f32 module semantics (looser tol absorbs bf16 weight quant).
    h = jnp.maximum(x @ w1 + b1, 0.0)
    h = jnp.maximum(h @ w2 + b2, 0.0)
    h = jnp.maximum(h @ w3 + b3, 0.0)
    ref_f32 = h @ w4 + b4
    assert jnp.allclose(q_values, ref_f32, atol=5e-2, rtol=5e-2)

    print("KERNEL_OK")
</pallas_src>

<mosaic_0001>
module attributes {stable_mosaic.version = 11 : i64} {
  func.func @_mlp_kernel(%arg0: i32, %arg1: memref<8x12xbf16, #tpu.memory_space<vmem>>, %arg2: memref<12x256xbf16, #tpu.memory_space<vmem>>, %arg3: memref<1x256xf32, #tpu.memory_space<vmem>>, %arg4: memref<256x256xbf16, #tpu.memory_space<vmem>>, %arg5: memref<1x256xf32, #tpu.memory_space<vmem>>, %arg6: memref<256x256xbf16, #tpu.memory_space<vmem>>, %arg7: memref<1x256xf32, #tpu.memory_space<vmem>>, %arg8: memref<256x8xbf16, #tpu.memory_space<vmem>>, %arg9: memref<1x8xf32, #tpu.memory_space<vmem>>, %arg10: memref<8x8xf32, #tpu.memory_space<vmem>>) attributes {dimension_semantics = [#tpu.dimension_semantics<parallel>], iteration_bounds = array<i64: 1>, scalar_prefetch = 0 : i64, scratch_operands = 0 : i64, tpu.core_type = #tpu.core_type<tc>, window_params = [{transform_indices = @transform_0, window_bounds = array<i64: 8, 12>}, {pipeline_mode = #tpu.pipeline_mode<synchronous>, transform_indices = @transform_1, window_bounds = array<i64: 12, 256>}, {pipeline_mode = #tpu.pipeline_mode<synchronous>, transform_indices = @transform_2, window_bounds = array<i64: 1, 256>}, {pipeline_mode = #tpu.pipeline_mode<synchronous>, transform_indices = @transform_3, window_bounds = array<i64: 256, 256>}, {pipeline_mode = #tpu.pipeline_mode<synchronous>, transform_indices = @transform_4, window_bounds = array<i64: 1, 256>}, {pipeline_mode = #tpu.pipeline_mode<synchronous>, transform_indices = @transform_5, window_bounds = array<i64: 256, 256>}, {pipeline_mode = #tpu.pipeline_mode<synchronous>, transform_indices = @transform_6, window_bounds = array<i64: 1, 256>}, {pipeline_mode = #tpu.pipeline_mode<synchronous>, transform_indices = @transform_7, window_bounds = array<i64: 256, 8>}, {pipeline_mode = #tpu.pipeline_mode<synchronous>, transform_indices = @transform_8, window_bounds = array<i64: 1, 8>}, {transform_indices = @transform_9, window_bounds = array<i64: 8, 8>}]} {
    %c0 = arith.constant 0 : index
    %c0_0 = arith.constant 0 : index
    %0 = vector.load %arg1[%c0, %c0_0] : memref<8x12xbf16, #tpu.memory_space<vmem>>, vector<8x12xbf16>
    %c0_1 = arith.constant 0 : index
    %c0_2 = arith.constant 0 : index
    %1 = vector.load %arg2[%c0_1, %c0_2] : memref<12x256xbf16, #tpu.memory_space<vmem>>, vector<12x256xbf16>
    %cst = arith.constant dense<0.000000e+00> : vector<8x256xf32>
    %2 = tpu.matmul %0, %1, %cst {dimension_numbers = #tpu.dot_dimension_numbers<[1], [0], [0], [1], [0, 0, 1, 1], [], []>} : vector<8x12xbf16>, vector<12x256xbf16>, vector<8x256xf32> -> vector<8x256xf32>
    %c0_3 = arith.constant 0 : index
    %c0_4 = arith.constant 0 : index
    %3 = vector.load %arg3[%c0_3, %c0_4] : memref<1x256xf32, #tpu.memory_space<vmem>>, vector<1x256xf32>
    %4 = vector.broadcast %3 : vector<1x256xf32> to vector<8x256xf32>
    %5 = arith.addf %2, %4 : vector<8x256xf32>
    %cst_5 = arith.constant 0.000000e+00 : f32
    %6 = vector.broadcast %cst_5 : f32 to vector<8x256xf32>
    %7 = arith.maximumf %5, %6 : vector<8x256xf32>
    %8 = arith.truncf %7 : vector<8x256xf32> to vector<8x256xbf16>
    %c0_6 = arith.constant 0 : index
    %c0_7 = arith.constant 0 : index
    %9 = vector.load %arg4[%c0_6, %c0_7] : memref<256x256xbf16, #tpu.memory_space<vmem>>, vector<256x256xbf16>
    %cst_8 = arith.constant dense<0.000000e+00> : vector<8x256xf32>
    %10 = tpu.matmul %8, %9, %cst_8 {dimension_numbers = #tpu.dot_dimension_numbers<[1], [0], [0], [1], [0, 0, 1, 1], [], []>} : vector<8x256xbf16>, vector<256x256xbf16>, vector<8x256xf32> -> vector<8x256xf32>
    %c0_9 = arith.constant 0 : index
    %c0_10 = arith.constant 0 : index
    %11 = vector.load %arg5[%c0_9, %c0_10] : memref<1x256xf32, #tpu.memory_space<vmem>>, vector<1x256xf32>
    %12 = vector.broadcast %11 : vector<1x256xf32> to vector<8x256xf32>
    %13 = arith.addf %10, %12 : vector<8x256xf32>
    %cst_11 = arith.constant 0.000000e+00 : f32
    %14 = vector.broadcast %cst_11 : f32 to vector<8x256xf32>
    %15 = arith.maximumf %13, %14 : vector<8x256xf32>
    %16 = arith.truncf %15 : vector<8x256xf32> to vector<8x256xbf16>
    %c0_12 = arith.constant 0 : index
    %c0_13 = arith.constant 0 : index
    %17 = vector.load %arg6[%c0_12, %c0_13] : memref<256x256xbf16, #tpu.memory_space<vmem>>, vector<256x256xbf16>
    %cst_14 = arith.constant dense<0.000000e+00> : vector<8x256xf32>
    %18 = tpu.matmul %16, %17, %cst_14 {dimension_numbers = #tpu.dot_dimension_numbers<[1], [0], [0], [1], [0, 0, 1, 1], [], []>} : vector<8x256xbf16>, vector<256x256xbf16>, vector<8x256xf32> -> vector<8x256xf32>
    %c0_15 = arith.constant 0 : index
    %c0_16 = arith.constant 0 : index
    %19 = vector.load %arg7[%c0_15, %c0_16] : memref<1x256xf32, #tpu.memory_space<vmem>>, vector<1x256xf32>
    %20 = vector.broadcast %19 : vector<1x256xf32> to vector<8x256xf32>
    %21 = arith.addf %18, %20 : vector<8x256xf32>
    %cst_17 = arith.constant 0.000000e+00 : f32
    %22 = vector.broadcast %cst_17 : f32 to vector<8x256xf32>
    %23 = arith.maximumf %21, %22 : vector<8x256xf32>
    %24 = arith.truncf %23 : vector<8x256xf32> to vector<8x256xbf16>
    %c0_18 = arith.constant 0 : index
    %c0_19 = arith.constant 0 : index
    %25 = vector.load %arg8[%c0_18, %c0_19] : memref<256x8xbf16, #tpu.memory_space<vmem>>, vector<256x8xbf16>
    %cst_20 = arith.constant dense<0.000000e+00> : vector<8x8xf32>
    %26 = tpu.matmul %24, %25, %cst_20 {dimension_numbers = #tpu.dot_dimension_numbers<[1], [0], [0], [1], [0, 0, 1, 1], [], []>} : vector<8x256xbf16>, vector<256x8xbf16>, vector<8x8xf32> -> vector<8x8xf32>
    %c0_21 = arith.constant 0 : index
    %c0_22 = arith.constant 0 : index
    %27 = vector.load %arg9[%c0_21, %c0_22] : memref<1x8xf32, #tpu.memory_space<vmem>>, vector<1x8xf32>
    %28 = vector.broadcast %27 : vector<1x8xf32> to vector<8x8xf32>
    %29 = arith.addf %26, %28 : vector<8x8xf32>
    %c0_23 = arith.constant 0 : index
    %c0_24 = arith.constant 0 : index
    %30 = vector.load %arg10[%c0_23, %c0_24] : memref<8x8xf32, #tpu.memory_space<vmem>>, vector<8x8xf32>
    tpu.vector_store %arg10[%c0_23, %c0_24], %29 {strides = array<i32>} : memref<8x8xf32, #tpu.memory_space<vmem>>, vector<8x8xf32>,
    return
  }
  func.func @transform_0(%arg0: i32) -> (i32, i32) {
    %c0_i32 = arith.constant 0 : i32
    %c0_i32_0 = arith.constant 0 : i32
    return %arg0, %c0_i32 : i32, i32
  }
  func.func @transform_1(%arg0: i32) -> (i32, i32) {
    %c0_i32 = arith.constant 0 : i32
    %c0_i32_0 = arith.constant 0 : i32
    %c0_i32_1 = arith.constant 0 : i32
    return %c0_i32, %c0_i32_0 : i32, i32
  }
  func.func @transform_2(%arg0: i32) -> (i32, i32) {
    %c0_i32 = arith.constant 0 : i32
    %c0_i32_0 = arith.constant 0 : i32
    %c0_i32_1 = arith.constant 0 : i32
    return %c0_i32, %c0_i32_0 : i32, i32
  }
  func.func @transform_3(%arg0: i32) -> (i32, i32) {
    %c0_i32 = arith.constant 0 : i32
    %c0_i32_0 = arith.constant 0 : i32
    %c0_i32_1 = arith.constant 0 : i32
    return %c0_i32, %c0_i32_0 : i32, i32
  }
  func.func @transform_4(%arg0: i32) -> (i32, i32) {
    %c0_i32 = arith.constant 0 : i32
    %c0_i32_0 = arith.constant 0 : i32
    %c0_i32_1 = arith.constant 0 : i32
    return %c0_i32, %c0_i32_0 : i32, i32
  }
  func.func @transform_5(%arg0: i32) -> (i32, i32) {
    %c0_i32 = arith.constant 0 : i32
    %c0_i32_0 = arith.constant 0 : i32
    %c0_i32_1 = arith.constant 0 : i32
    return %c0_i32, %c0_i32_0 : i32, i32
  }
  func.func @transform_6(%arg0: i32) -> (i32, i32) {
    %c0_i32 = arith.constant 0 : i32
    %c0_i32_0 = arith.constant 0 : i32
    %c0_i32_1 = arith.constant 0 : i32
    return %c0_i32, %c0_i32_0 : i32, i32
  }
  func.func @transform_7(%arg0: i32) -> (i32, i32) {
    %c0_i32 = arith.constant 0 : i32
    %c0_i32_0 = arith.constant 0 : i32
    %c0_i32_1 = arith.constant 0 : i32
    return %c0_i32, %c0_i32_0 : i32, i32
  }
  func.func @transform_8(%arg0: i32) -> (i32, i32) {
    %c0_i32 = arith.constant 0 : i32
    %c0_i32_0 = arith.constant 0 : i32
    %c0_i32_1 = arith.constant 0 : i32
    return %c0_i32, %c0_i32_0 : i32, i32
  }
  func.func @transform_9(%arg0: i32) -> (i32, i32) {
    %c0_i32 = arith.constant 0 : i32
    %c0_i32_0 = arith.constant 0 : i32
    return %arg0, %c0_i32 : i32, i32
  }
}

</mosaic_0001>

<bundles_post_ra>
// kernel: dqn_forward.1
= control target key start
LH: loop header
LB: loop body
LE: loop exit
PB: predicated region body
PF: predicated region fallthrough
CT: control target
= control target key end

     0   :  { %14 = vsyncpa [#allocation3], 0  ;;  %s1270_s0 = inlined_call_operand.vmem [shape: bf16[8,12], index: 0, kind: input, shape index: {}]   ;;  %s1271_s1 = inlined_call_operand.vmem [shape: bf16[12,256], index: 1, kind: input, shape index: {}]   ;;  %s1272_s2 = inlined_call_operand.vmem [shape: f32[1,256], index: 2, kind: input, shape index: {}]   ;;  %s1273_s3 = inlined_call_operand.hbm [shape: bf16[256,256], index: 3, kind: input, shape index: {}]   ;;  %s1274_s4 = inlined_call_operand.vmem [shape: f32[1,256], index: 4, kind: input, shape index: {}]   ;;  %s1275_s5 = inlined_call_operand.hbm [shape: bf16[256,256], index: 5, kind: input, shape index: {}]   ;;  %s1276_s6 = inlined_call_operand.vmem [shape: f32[1,256], index: 6, kind: input, shape index: {}]   ;;  %s1277_s7 = inlined_call_operand.vmem [shape: bf16[256,8], index: 7, kind: input, shape index: {}]   ;;  %s1278_s8 = inlined_call_operand.vmem [shape: f32[1,8], index: 8, kind: input, shape index: {}]   ;;  %s1279_s9 = inlined_call_operand.hbm [shape: f32[8,8], index: 9, kind: output, shape index: {}]  }
   0x1   :  { %15 = vsyncpa [#allocation6], 0 }
   0x2   :  { %16 = vsyncpa [#allocation4], 0  ;;  %s1126_s30 = smov [#allocation2]  }
   0x3   :  { %s28_s10 = sshll.u32 %s1126_s30, 4  ;;  %s29_s10 = int_to_ptr.vmem [resolvable:$true] %s28_s10 }
   0x4   :  { %s1068_s11 = scalar_lea.vmem %s29_s10, 4096  ;;  %p1073_p1 = scmp.lt.s32.totalorder %s29_s10, %s29_s10 }
   0x5   :  { %p1069_p0 = scmp.ne.s32.totalorder %s29_s10, %s1068_s11  ;;  %p1074_p2 = scmp.lt.s32.totalorder %s1068_s11, %s1068_s11 }
   0x7   :  { %p1075_p3 = por %p1074_p2, %p1073_p1 }
   0x9   :  { %p1076_p4 = pnand %p1075_p3, %p1069_p0 }
   0xb   :  { %1079 = shalt.err (!%p1076_p4)
}
   0xc   :  { %s1127_s12 = smov 128   ;;  %s1128_s13 = smov 8  }
   0xd   :  { %34 = dma.hbm_to_vmem [thread:$0]  %s1273_s3, 4096, %s29_s10, [#allocation3], %s1127_s12, %s1127_s12, %s1128_s13  }
   0xe   :  { %s1129_s16 = smov [#allocation5]  }
   0xf   :  { %s42_s17 = sshll.u32 %s1129_s16, 4  ;;  %s43_s17 = int_to_ptr.vmem [resolvable:$true] %s42_s17 }
  0x10   :  { %s1088_s18 = scalar_lea.vmem %s43_s17, 4096  ;;  %p1093_p6 = scmp.lt.s32.totalorder %s43_s17, %s43_s17 }
  0x11   :  { %p1089_p5 = scmp.ne.s32.totalorder %s43_s17, %s1088_s18  ;;  %p1094_p7 = scmp.lt.s32.totalorder %s1088_s18, %s1088_s18 }
  0x13   :  { %p1095_p8 = por %p1094_p7, %p1093_p6 }
  0x15   :  { %p1096_p9 = pnand %p1095_p8, %p1089_p5 }
  0x17   :  { %1099 = shalt.err (!%p1096_p9)
}
  0x18   :  { %48 = dma.hbm_to_vmem [thread:$0]  %s1275_s5, 4096, %s43_s17, [#allocation6], %s1127_s12, %s1127_s12, %s1128_s13  }
  0x19   :  { %1120 = dma.done.wait [#allocation3], 4096  }
  0x1a   :  { %1121 = vsyncadd [#allocation3], 4294963200 }
  0x1b   :  { %1122 = dma.done.wait [#allocation6], 4096  }
  0x1c   :  { %1123 = vsyncadd [#allocation6], 4294963200  ;;  %v1130_v0 = vmov 0   ;;  %vm89_vm0 = vcmask 1045504   ;;  %v948_v3 = vld [vmem:[#allocation2 + $0x74] ss:$8 sps:$4 sm:$0xff]  }
  0x1d   :  { %128 = vmatprep.mubr.bf16.mxu0 %v1130_v0  ;;  %v945_v1 = vld [vmem:[%s1271_s1 + $0x4] ss:$8 sps:$4 sm:$0x3f]   ;;  %v947_v2 = vld [vmem:[%s1271_s1] ss:$8 sps:$4 sm:$0x3f]   ;;  %345 = vmatprep.subr.bf16.mxu1 %v948_v3 }
  0x1e   :  { %834 = vmatprep.subr.msk.bf16.mxu0 %vm89_vm0, %v945_v1  ;;  %v950_v4 = vld [vmem:[#allocation2 + $0x70] ss:$8 sps:$4 sm:$0xff]   ;;  %v91_v5 = vsel %vm89_vm0, %v947_v2, 0  ;;  %v951_v6 = vld [vmem:[#allocation2 + $0x64] ss:$8 sps:$4 sm:$0xff]   ;;  %vm85_vm1 = vcmask 97280   ;;  %v67_v1 = vlaneseq }
  0x1f   :  { %111 = vmatpush1.bf16.msra.mxu0 %v91_v5  ;;  %v62_v7 = vld [vmem:[%s1270_s0] sm:$0xf]  ;;  %346 = vmatpush1.bf16.msra.mxu1 %v950_v4  ;;  %v954_v9 = vld [vmem:[#allocation2 + $0x54] ss:$8 sps:$4 sm:$0xff]   ;;  %v956_v10 = vld [vmem:[#allocation2 + $0x50] ss:$8 sps:$4 sm:$0xff]  }
  0x20   :  { %v953_v8 = vld [vmem:[#allocation2 + $0x60] ss:$8 sps:$4 sm:$0xff]   ;;  %347 = vmatprep.subr.bf16.mxu1 %v951_v6  ;;  %v957_v11 = vld [vmem:[#allocation2 + $0x44] ss:$8 sps:$4 sm:$0xff]   ;;  %v960_v13 = vld [vmem:[#allocation2 + $0x34] ss:$8 sps:$4 sm:$0xff]  }
  0x21   :  { %v959_v12 = vld [vmem:[#allocation2 + $0x40] ss:$8 sps:$4 sm:$0xff]   ;;  %v962_v14 = vld [vmem:[#allocation2 + $0x30] ss:$8 sps:$4 sm:$0xff]   ;;  %v963_v15 = vld [vmem:[#allocation2 + $0x24] ss:$8 sps:$4 sm:$0xff]  }
  0x22   :  { %835 = vmatmul.mubr.msk.bf16.vlgmr.msra.gmra.mxu0 %vm85_vm1, %v62_v7  ;;  %v965_v16 = vld [vmem:[#allocation2 + $0x20] ss:$8 sps:$4 sm:$0xff]   ;;  %v966_v17 = vld [vmem:[#allocation2 + $0x14] ss:$8 sps:$4 sm:$0xff]   ;;  %v968_v18 = vld [vmem:[#allocation2 + $0x10] ss:$8 sps:$4 sm:$0xff]  }
  0x23   :  { %348 = vmatpush1.bf16.msra.mxu1 %v953_v8  ;;  %v969_v19 = vld [vmem:[#allocation2 + $0x4] ss:$8 sps:$4 sm:$0xff]   ;;  %v971_v20 = vld [vmem:[#allocation2] ss:$8 sps:$4 sm:$0xff]   ;;  %v972_v21 = vld [vmem:[#allocation2 + $0xf4] ss:$8 sps:$4 sm:$0xff]  }
  0x24   :  { %349 = vmatprep.subr.bf16.mxu1 %v954_v9  ;;  %v974_v22 = vld [vmem:[#allocation2 + $0xf0] ss:$8 sps:$4 sm:$0xff]   ;;  %v975_v23 = vld [vmem:[#allocation2 + $0xe4] ss:$8 sps:$4 sm:$0xff]   ;;  %v977_v24 = vld [vmem:[#allocation2 + $0xe0] ss:$8 sps:$4 sm:$0xff]  }
  0x25   :  { %v978_v25 = vld [vmem:[#allocation2 + $0xd4] ss:$8 sps:$4 sm:$0xff]   ;;  %v980_v26 = vld [vmem:[#allocation2 + $0xd0] ss:$8 sps:$4 sm:$0xff]   ;;  %v981_v27 = vld [vmem:[#allocation2 + $0xc4] ss:$8 sps:$4 sm:$0xff]  }
  0x26   :  { %v983_v28 = vld [vmem:[#allocation2 + $0xc0] ss:$8 sps:$4 sm:$0xff]   ;;  %v984_v29 = vld [vmem:[#allocation2 + $0xb4] ss:$8 sps:$4 sm:$0xff]   ;;  %v986_v30 = vld [vmem:[#allocation2 + $0xb0] ss:$8 sps:$4 sm:$0xff]  }
  0x27   :  { %350 = vmatpush1.bf16.msra.mxu1 %v956_v10  ;;  %v987_v31 = vld [vmem:[#allocation2 + $0xa4] ss:$8 sps:$4 sm:$0xff]   ;;  %v989_v32 = vld [vmem:[#allocation2 + $0xa0] ss:$8 sps:$4 sm:$0xff]   ;;  %v990_v33 = vld [vmem:[#allocation2 + $0x94] ss:$8 sps:$4 sm:$0xff]  }
  0x28   :  { %351 = vmatprep.subr.bf16.mxu1 %v957_v11  ;;  %v992_v34 = vld [vmem:[#allocation2 + $0x90] ss:$8 sps:$4 sm:$0xff]   ;;  %v993_v35 = vld [vmem:[#allocation2 + $0x84] ss:$8 sps:$4 sm:$0xff]   ;;  %v995_v36 = vld [vmem:[#allocation2 + $0x80] ss:$8 sps:$4 sm:$0xff]  }
  0x29   :  { %v996_v37 = vld [vmem:[#allocation5 + $0x70] ss:$8 sps:$4 sm:$0xff]   ;;  %v998_v38 = vld [vmem:[#allocation5 + $0x74] ss:$8 sps:$4 sm:$0xff]   ;;  %v1001_v39 = vld [vmem:[#allocation5 + $0x64] ss:$8 sps:$4 sm:$0xff]  }
  0x2a   :  { %594 = vmatprep.subr.bf16.mxu0 %v998_v38  ;;  %v999_v40 = vld [vmem:[#allocation5 + $0x60] ss:$8 sps:$4 sm:$0xff]   ;;  %v1004_v41 = vld [vmem:[#allocation5 + $0x54] ss:$8 sps:$4 sm:$0xff]   ;;  %v1002_v42 = vld [vmem:[#allocation5 + $0x50] ss:$8 sps:$4 sm:$0xff]  }
  0x2b   :  { %352 = vmatpush1.bf16.msra.mxu1 %v959_v12  ;;  %595 = vmatpush1.bf16.msra.mxu0 %v996_v37  ;;  %v1007_v43 = vld [vmem:[#allocation5 + $0x44] ss:$8 sps:$4 sm:$0xff]   ;;  %v1005_v44 = vld [vmem:[#allocation5 + $0x40] ss:$8 sps:$4 sm:$0xff]   ;;  %v1010_v45 = vld [vmem:[#allocation5 + $0x34] ss:$8 sps:$4 sm:$0xff]  }
  0x2c   :  { %353 = vmatprep.subr.bf16.mxu1 %v960_v13  ;;  %596 = vmatprep.subr.bf16.mxu0 %v1001_v39  ;;  %v1008_v46 = vld [vmem:[#allocation5 + $0x30] ss:$8 sps:$4 sm:$0xff]   ;;  %v1013_v47 = vld [vmem:[#allocation5 + $0x24] ss:$8 sps:$4 sm:$0xff]   ;;  %v1011_v48 = vld [vmem:[#allocation5 + $0x20] ss:$8 sps:$4 sm:$0xff]  }
  0x2d   :  { %v1016_v49 = vld [vmem:[#allocation5 + $0x14] ss:$8 sps:$4 sm:$0xff]   ;;  %v1014_v50 = vld [vmem:[#allocation5 + $0x10] ss:$8 sps:$4 sm:$0xff]   ;;  %v1019_v51 = vld [vmem:[#allocation5 + $0x4] ss:$8 sps:$4 sm:$0xff]  }
  0x2e   :  { %v1017_v52 = vld [vmem:[#allocation5] ss:$8 sps:$4 sm:$0xff]   ;;  %v1022_v53 = vld [vmem:[#allocation5 + $0xf4] ss:$8 sps:$4 sm:$0xff]   ;;  %v1020_v54 = vld [vmem:[#allocation5 + $0xf0] ss:$8 sps:$4 sm:$0xff]  }
  0x2f   :  { %354 = vmatpush1.bf16.msra.mxu1 %v962_v14  ;;  %597 = vmatpush1.bf16.msra.mxu0 %v999_v40  ;;  %v1025_v55 = vld [vmem:[#allocation5 + $0xe4] ss:$8 sps:$4 sm:$0xff]   ;;  %v1023_v56 = vld [vmem:[#allocation5 + $0xe0] ss:$8 sps:$4 sm:$0xff]   ;;  %v1028_v57 = vld [vmem:[#allocation5 + $0xd4] ss:$8 sps:$4 sm:$0xff]  }
  0x30   :  { %355 = vmatprep.subr.bf16.mxu1 %v963_v15  ;;  %598 = vmatprep.subr.bf16.mxu0 %v1004_v41  ;;  %v1026_v58 = vld [vmem:[#allocation5 + $0xd0] ss:$8 sps:$4 sm:$0xff]   ;;  %v1031_v59 = vld [vmem:[#allocation5 + $0xc4] ss:$8 sps:$4 sm:$0xff]   ;;  %v1029_v60 = vld [vmem:[#allocation5 + $0xc0] ss:$8 sps:$4 sm:$0xff]  }
  0x31   :  { %v1034_v61 = vld [vmem:[#allocation5 + $0xb4] ss:$8 sps:$4 sm:$0xff]   ;;  %v1032_v62 = vld [vmem:[#allocation5 + $0xb0] ss:$8 sps:$4 sm:$0xff]   ;;  %v1037_v63 = vld [vmem:[#allocation5 + $0xa4] ss:$8 sps:$4 sm:$0xff]  }
  0x32   :  { %v1035_v0 = vld [vmem:[#allocation5 + $0xa0] ss:$8 sps:$4 sm:$0xff]   ;;  %v68_v2 = vshrl.u32 %v67_v1, 7  ;;  %vm814_vm2 = vcmask 64512  }
  0x33   :  { %356 = vmatpush1.bf16.msra.mxu1 %v965_v16  ;;  %599 = vmatpush1.bf16.msra.mxu0 %v1002_v42  ;;  %v65_v4 = vld [vmem:[%s1272_s2] sm:$0x3] }
  0x34   :  { %357 = vmatprep.subr.bf16.mxu1 %v966_v17  ;;  %600 = vmatprep.subr.bf16.mxu0 %v1007_v43  ;;  %v1197_v3 = vsub.s32 0, %v68_v2  ;;  %v1202_v5 = vsub.s32 1, %v68_v2  ;;  %v900_v1 = vld [vmem:[%s1278_s8] ss:$0 sm:$0xff] }
  0x36   :  { %v70_v6 = vrot.slane %v65_v4, %v1197_v3  ;;  %v74_v7 = vrot.slane %v65_v4, %v1202_v5 }
  0x37   :  { %358 = vmatpush1.bf16.msra.mxu1 %v968_v18  ;;  %601 = vmatpush1.bf16.msra.mxu0 %v1005_v44  ;;  %v1040_v18 = vld [vmem:[#allocation5 + $0x94] ss:$8 sps:$4 sm:$0xff]  }
  0x38   :  { %359 = vmatprep.subr.bf16.mxu1 %v969_v19  ;;  %602 = vmatprep.subr.bf16.mxu0 %v1010_v45  ;;  %v1038_v19 = vld [vmem:[#allocation5 + $0x90] ss:$8 sps:$4 sm:$0xff]  }
  0x3b   :  { %360 = vmatpush1.bf16.msra.mxu1 %v971_v20  ;;  %603 = vmatpush1.bf16.msra.mxu0 %v1008_v46  ;;  %v1043_v20 = vld [vmem:[#allocation5 + $0x84] ss:$8 sps:$4 sm:$0xff]  }
  0x3c   :  { %361 = vmatprep.subr.bf16.mxu1 %v972_v21  ;;  %604 = vmatprep.subr.bf16.mxu0 %v1013_v47  ;;  %v1041_v21 = vld [vmem:[#allocation5 + $0x80] ss:$8 sps:$4 sm:$0xff]  }
  0x3d   :  { %v1056_v47 = vld [vmem:[%s1277_s7 + $0x48] sm:$0xff]  }
  0x3f   :  { %362 = vmatpush2.bf16.msra.mxu1 %v974_v22  ;;  %605 = vmatpush1.bf16.msra.mxu0 %v1011_v48  ;;  %v1044_v22 = vld [vmem:[%s1277_s7 + $0x78] sm:$0xff]   ;;  %v1057_v48 = vld [vmem:[%s1277_s7 + $0x8] sm:$0xff]  }
  0x40   :  { %363 = vmatprep.subr.bf16.mxu1 %v975_v23  ;;  %606 = vmatprep.subr.bf16.mxu0 %v1016_v49  ;;  %v1045_v23 = vld [vmem:[%s1277_s7 + $0x38] sm:$0xff]   ;;  %v1058_v49 = vld [vmem:[%s1277_s7 + $0x40] sm:$0xff]  }
  0x43   :  { %364 = vmatpush2.bf16.msra.mxu1 %v977_v24  ;;  %607 = vmatpush1.bf16.msra.mxu0 %v1014_v50  ;;  %v1046_v24 = vld [vmem:[%s1277_s7 + $0x70] sm:$0xff]   ;;  %v1059_v50 = vld [vmem:[%s1277_s7] sm:$0xff]  }
  0x44   :  { %365 = vmatprep.subr.bf16.mxu1 %v978_v25  ;;  %608 = vmatprep.subr.bf16.mxu0 %v1019_v51  ;;  %v1047_v25 = vld [vmem:[%s1277_s7 + $0x30] sm:$0xff]   ;;  %v422_v51 = vld [vmem:[%s1276_s6] sm:$0x3]  ;;  %s1131_s6 = smov [#allocation7]  }
  0x45   :  { %s822_s13 = sshll.u32 %s1131_s6, 4  ;;  %s823_s13 = int_to_ptr.vmem [resolvable:$true] %s822_s13 }
  0x46   :  { %s1100_s14 = scalar_lea.vmem %s823_s13, 128  ;;  %p1105_p11 = scmp.lt.s32.totalorder %s823_s13, %s823_s13 }
  0x47   :  { %366 = vmatpush2.bf16.msra.mxu1 %v980_v26  ;;  %609 = vmatpush1.bf16.msra.mxu0 %v1017_v52  ;;  %v1048_v26 = vld [vmem:[%s1277_s7 + $0x68] sm:$0xff]   ;;  %v427_v52 = vrot.slane %v422_v51, %v1197_v3  ;;  %p1101_p10 = scmp.ne.s32.totalorder %s823_s13, %s1100_s14  ;;  %p1106_p12 = scmp.lt.s32.totalorder %s1100_s14, %s1100_s14 }
  0x48   :  { %367 = vmatprep.subr.bf16.mxu1 %v981_v27  ;;  %610 = vmatprep.subr.bf16.mxu0 %v1022_v53  ;;  %v1049_v27 = vld [vmem:[%s1277_s7 + $0x28] sm:$0xff]   ;;  %v431_v53 = vrot.slane %v422_v51, %v1202_v5 }
  0x49   :  { %p1107_p13 = por %p1106_p12, %p1105_p11 }
  0x4b   :  { %368 = vmatpush2.bf16.msra.mxu1 %v983_v28  ;;  %611 = vmatpush2.bf16.msra.mxu0 %v1020_v54  ;;  %v1050_v28 = vld [vmem:[%s1277_s7 + $0x60] sm:$0xff]   ;;  %p1108_p0 = pnand %p1107_p13, %p1101_p10 }
  0x4c   :  { %369 = vmatprep.subr.bf16.mxu1 %v984_v29  ;;  %612 = vmatprep.subr.bf16.mxu0 %v1025_v55  ;;  %v1051_v29 = vld [vmem:[%s1277_s7 + $0x20] sm:$0xff]  }
  0x4f   :  { %370 = vmatpush2.bf16.msra.mxu1 %v986_v30  ;;  %613 = vmatpush2.bf16.msra.mxu0 %v1023_v56  ;;  %v1052_v30 = vld [vmem:[%s1277_s7 + $0x58] sm:$0xff]  }
  0x50   :  { %371 = vmatprep.subr.bf16.mxu1 %v987_v31  ;;  %614 = vmatprep.subr.bf16.mxu0 %v1028_v57  ;;  %v1053_v31 = vld [vmem:[%s1277_s7 + $0x18] sm:$0xff]  }
  0x53   :  { %372 = vmatpush2.bf16.msra.mxu1 %v989_v32  ;;  %615 = vmatpush2.bf16.msra.mxu0 %v1026_v58  ;;  %v1054_v32 = vld [vmem:[%s1277_s7 + $0x50] sm:$0xff]  }
  0x54   :  { %373 = vmatprep.subr.bf16.mxu1 %v990_v33  ;;  %616 = vmatprep.subr.bf16.mxu0 %v1031_v59  ;;  %v1055_v33 = vld [vmem:[%s1277_s7 + $0x10] sm:$0xff]  }
  0x57   :  { %374 = vmatpush2.bf16.msra.mxu1 %v992_v34  ;;  %617 = vmatpush2.bf16.msra.mxu0 %v1029_v60  ;;  %v173_v34 = vld [vmem:[%s1274_s4] sm:$0x3] }
  0x58   :  { %375 = vmatprep.subr.bf16.mxu1 %v993_v35  ;;  %618 = vmatprep.subr.bf16.mxu0 %v1034_v61  ;;  %v178_v35 = vrot.slane %v173_v34, %v1197_v3 }
  0x5b   :  { %376 = vmatpush2.bf16.msra.mxu1 %v995_v36  ;;  %619 = vmatpush2.bf16.msra.mxu0 %v1032_v62  ;;  %v182_v36 = vrot.slane %v173_v34, %v1202_v5 }
  0x5c   :  { %620 = vmatprep.subr.bf16.mxu0 %v1037_v63  ;;  %917 = vmatprep.subr.bf16.mxu1 %v1044_v22 }
  0x5f   :  { %621 = vmatpush2.bf16.msra.mxu0 %v1035_v0 }
  0x60   :  { %622 = vmatprep.subr.bf16.mxu0 %v1040_v18 }
  0x63   :  { %623 = vmatpush2.bf16.msra.mxu0 %v1038_v19 }
  0x64   :  { %624 = vmatprep.subr.bf16.mxu0 %v1043_v20 }
  0x67   :  { %625 = vmatpush2.bf16.msra.mxu0 %v1041_v21 }
  0xe2   :  { %v130_v8 = vpop.f32.mrf.mxu0 }
  0xe3   :  { %v131_v9 = vadd.f32 %v130_v8, %v70_v6 }
  0xe4   :  { %v132_v10 = vpop.f32.mrf.mxu0 }
  0xe5   :  { %v133_v11 = vadd.f32 %v132_v10, %v74_v7  ;;  %v137_v12 = vmax.f32 %v131_v9, 0.0 }
  0xe6   :  { %v134_v13 = vpop.f32.mrf.mxu0 }
  0xe7   :  { %v138_v14 = vmax.f32 %v133_v11, 0.0  ;;  %v139_v17 = vpack.c.bf16 %v137_v12, %v137_v12 }
  0xe8   :  { %v135_v15 = vpop.f32.mrf.mxu0 }
  0xe9   :  { %v140_v16 = vpack.c.bf16 %v138_v14, %v138_v14 }
  0xeb   :  { %377 = vmatprep.mubr.bf16.mxu1 %v140_v16 }
  0xec   :  { %378 = vmatmul.mubr.bf16.vlgmr.msra.gmra.mxu1 %v139_v17 }
  0xed   :  { %918 = vmatpush3.bf16.msra.mxu1 %v1045_v23 }
  0xee   :  { %919 = vmatprep.subr.bf16.mxu1 %v1046_v24 }
  0xf1   :  { %920 = vmatpush3.bf16.msra.mxu1 %v1047_v25 }
  0xf2   :  { %921 = vmatprep.subr.bf16.mxu1 %v1048_v26 }
  0xf5   :  { %922 = vmatpush3.bf16.msra.mxu1 %v1049_v27 }
  0xf6   :  { %923 = vmatprep.subr.bf16.mxu1 %v1050_v28 }
  0xf9   :  { %924 = vmatpush3.bf16.msra.mxu1 %v1051_v29 }
  0xfa   :  { %925 = vmatprep.subr.bf16.mxu1 %v1052_v30 }
  0xfd   :  { %926 = vmatpush3.bf16.msra.mxu1 %v1053_v31 }
  0xfe   :  { %927 = vmatprep.subr.bf16.mxu1 %v1054_v32 }
 0x101   :  { %928 = vmatpush3.bf16.msra.mxu1 %v1055_v33 }
 0x102   :  { %929 = vmatprep.subr.bf16.mxu1 %v1056_v47 }
 0x105   :  { %930 = vmatpush3.bf16.msra.mxu1 %v1057_v48 }
 0x106   :  { %931 = vmatprep.subr.bf16.mxu1 %v1058_v49 }
 0x109   :  { %932 = vmatpush3.bf16.msra.mxu1 %v1059_v50 }
 0x1ac   :  { %v379_v37 = vpop.f32.mrf.mxu1 }
 0x1ad   :  { %v380_v38 = vadd.f32 %v379_v37, %v178_v35 }
 0x1ae   :  { %v381_v39 = vpop.f32.mrf.mxu1 }
 0x1af   :  { %v382_v40 = vadd.f32 %v381_v39, %v182_v36  ;;  %v386_v41 = vmax.f32 %v380_v38, 0.0 }
 0x1b0   :  { %v383_v42 = vpop.f32.mrf.mxu1 }
 0x1b1   :  { %v387_v43 = vmax.f32 %v382_v40, 0.0  ;;  %v388_v46 = vpack.c.bf16 %v386_v41, %v386_v41 }
 0x1b2   :  { %v384_v44 = vpop.f32.mrf.mxu1 }
 0x1b3   :  { %v389_v45 = vpack.c.bf16 %v387_v43, %v387_v43 }
 0x1b5   :  { %626 = vmatprep.mubr.bf16.mxu0 %v389_v45 }
 0x1b6   :  { %627 = vmatmul.mubr.bf16.vlgmr.msra.gmra.mxu0 %v388_v46 }
 0x276   :  { %v628_v54 = vpop.f32.mrf.mxu0 }
 0x277   :  { %v629_v55 = vadd.f32 %v628_v54, %v427_v52 }
 0x278   :  { %v630_v56 = vpop.f32.mrf.mxu0 }
 0x279   :  { %v631_v57 = vadd.f32 %v630_v56, %v431_v53  ;;  %v635_v58 = vmax.f32 %v629_v55, 0.0 }
 0x27a   :  { %v632_v59 = vpop.f32.mrf.mxu0 }
 0x27b   :  { %v636_v60 = vmax.f32 %v631_v57, 0.0  ;;  %v637_v63 = vpack.c.bf16 %v635_v58, %v635_v58 }
 0x27c   :  { %v633_v61 = vpop.f32.mrf.mxu0 }
 0x27d   :  { %v638_v62 = vpack.c.bf16 %v636_v60, %v636_v60 }
 0x27f   :  { %806 = vmatprep.mubr.bf16.mxu1 %v638_v62 }
 0x280   :  { %807 = vmatmul.mubr.bf16.vlgmr.msra.gmra.mxu1 %v637_v63 }
 0x340   :  { %v933_v0 = vpop.f32.mrf.mxu1 }
 0x342   :  { %v934_v2 = vpop.f32.mrf.mxu1 }
 0x343   :  { %v935_v3 = vadd.f32 %v934_v2, %v933_v0 }
 0x344   :  { %v936_v4 = vpop.f32.mrf.mxu1 }
 0x345   :  { %v809_v5 = vadd.f32 %v935_v3, %v900_v1 }
 0x346   :  { %v937_v6 = vpop.f32.mrf.mxu1 }
 0x347   :  { %815 = vst.msk [vmem:[#allocation7] sm:$0xff] %vm814_vm2, %v809_v5 }
 0x348   :  { %1111 = shalt.err (!%p1108_p0)
}
 0x349   :  { %825 = dma.vmem_to_hbm [thread:$0]  %s823_s13, 128, %s1279_s9, [#allocation4]  }
 0x34a   :  { %1124 = dma.done.wait [#allocation4], 128  }
 0x34b   :  { %1125 = vsyncadd [#allocation4], 4294967168 }
 0x34c   :  { %829 = vsyncpa [#allocation3], 1 }
 0x34d   :  { %830 = vsyncpa [#allocation6], 1 }
 0x34e   :  { %831 = vsyncpa [#allocation4], 1 }

</bundles_post_ra>
